<compile_context>
chip_gen: v6e
topology: v6e:2x2x1
jax: 0.10.0
libtpu: 0.0.40
codegen_flags: <defaults>
</compile_context>

<pallas_src>
import jax
import jax.numpy as jnp
from jax.experimental import pallas as pl
from jax.experimental.pallas import tpu as pltpu


# ----------------------------------------------------------------------------
# Fused per-bag kernel.
#   x     : (T, L)   one bag of tile features
#   h     = tanh(x @ Vw + Vb)                    (T, M)   MXU + EUP
#   s     = sum(h * w_row, -1) + w_b             (T, 1)   lane reduce
#   att   = softmax_T(s)                         (T, 1)   sublane reduce
#   agg   = sum_T(att * x)                       (1, L)
#   out   = agg @ Cw + Cb                        (1, C)
#   inst  = sum(x * ic_row, -1) + ic_b           (T, 1)   per-tile instance logits
# ----------------------------------------------------------------------------
def _attention_mil_kernel(x_ref, vw_ref, vb_ref, ww_ref, wb_ref,
                          cw_ref, cb_ref, icw_ref, icb_ref,
                          out_ref, att_ref, inst_ref):
    x = x_ref[0]                                                     # (T, L)

    # AttentionPooling.V + tanh
    h = jnp.tanh(jnp.dot(x, vw_ref[...], preferred_element_type=jnp.float32)
                 + vb_ref[...])                                      # (T, M)

    # AttentionPooling.w  (Linear(M, 1)) as a lane reduction
    s = jnp.sum(h * ww_ref[...], axis=-1, keepdims=True) + wb_ref[...]   # (T, 1)

    # softmax over the tile axis (dim=1 of the (B, T, 1) tensor)
    s = s - jnp.max(s, axis=0, keepdims=True)
    e = jnp.exp(s)
    att = e / jnp.sum(e, axis=0, keepdims=True)                      # (T, 1)

    # aggregated_features = input^T @ w  ->  sum over tiles of att * x
    agg = jnp.sum(x * att, axis=0, keepdims=True)                    # (1, L)

    # bag-level classifier
    logits = (jnp.dot(agg, cw_ref[...], preferred_element_type=jnp.float32)
              + cb_ref[...])                                         # (1, C)
    out_ref[...] = logits[None].astype(out_ref.dtype)                # (1, 1, C)

    # instance classifier applied to every tile (linear -> gather logits later)
    inst = jnp.sum(x * icw_ref[...], axis=-1, keepdims=True) + icb_ref[...]  # (T, 1)

    att_ref[...] = att[None].astype(att_ref.dtype)                   # (1, T, 1)
    inst_ref[...] = inst[None].astype(inst_ref.dtype)                # (1, T, 1)


def attention_mil_pallas(params, xb):
    """xb: (B, T, L) -> (out (B,C), att (B,T,1), inst_logits (B,T))."""
    B, T, L = xb.shape
    M = params["V_w"].shape[1]
    C = params["c_w"].shape[1]

    out3, att3, inst3 = pl.pallas_call(
        _attention_mil_kernel,
        out_shape=(
            jax.ShapeDtypeStruct((B, 1, C), jnp.float32),
            jax.ShapeDtypeStruct((B, T, 1), jnp.float32),
            jax.ShapeDtypeStruct((B, T, 1), jnp.float32),
        ),
        grid=(B,),
        in_specs=[
            pl.BlockSpec((1, T, L), lambda b: (b, 0, 0)),   # x (one bag per step)
            pl.BlockSpec((L, M), lambda b: (0, 0)),         # V weight (transposed)
            pl.BlockSpec((1, M), lambda b: (0, 0)),         # V bias
            pl.BlockSpec((1, M), lambda b: (0, 0)),         # w weight row
            pl.BlockSpec((1, 1), lambda b: (0, 0)),         # w bias
            pl.BlockSpec((L, C), lambda b: (0, 0)),         # classifier weight
            pl.BlockSpec((1, C), lambda b: (0, 0)),         # classifier bias
            pl.BlockSpec((1, L), lambda b: (0, 0)),         # instance-cls weight row
            pl.BlockSpec((1, 1), lambda b: (0, 0)),         # instance-cls bias
        ],
        out_specs=(
            pl.BlockSpec((1, 1, C), lambda b: (b, 0, 0)),
            pl.BlockSpec((1, T, 1), lambda b: (b, 0, 0)),
            pl.BlockSpec((1, T, 1), lambda b: (b, 0, 0)),
        ),
        compiler_params=pltpu.CompilerParams(
            dimension_semantics=("parallel",),
            vmem_limit_bytes=32 * 1024 * 1024,
        ),
    )(xb,
      params["V_w"], params["V_b"].reshape(1, M),
      params["w_w"], params["w_b"].reshape(1, 1),
      params["c_w"], params["c_b"].reshape(1, C),
      params["ic_w"], params["ic_b"].reshape(1, 1))

    return out3.reshape(B, C), att3, inst3.reshape(B, T)


def _bce_with_logits_mean(logits, targets):
    return jnp.mean(jnp.maximum(logits, 0.0) - logits * targets
                    + jnp.log1p(jnp.exp(-jnp.abs(logits))))


def attention_mil_forward(params, x, n_tiles, k_instance):
    """Matches AttentionMIL.forward: returns (out, w, instance_loss)."""
    bn, L = x.shape
    B = bn // n_tiles
    xb = x.reshape(B, n_tiles, L)

    out, att, inst_logits = attention_mil_pallas(params, xb)

    # ---- inst_eval (plain-JAX glue on tiny (B, n_tiles) arrays) -------------
    w_sq = att.reshape(B, n_tiles)                         # w.squeeze()
    _, top_p_ids = jax.lax.top_k(w_sq, k_instance)         # torch.topk(w, k)
    _, top_n_ids = jax.lax.top_k(-w_sq, k_instance)        # torch.topk(-w, k)
    # instance_classifier is linear, so classifying gathered feature rows equals
    # gathering the per-tile logits already computed inside the kernel.
    p_logits = jnp.take_along_axis(inst_logits, top_p_ids, axis=1).reshape(-1)
    n_logits = jnp.take_along_axis(inst_logits, top_n_ids, axis=1).reshape(-1)
    all_logits = jnp.concatenate([p_logits, n_logits])
    all_targets = jnp.concatenate(
        [jnp.ones_like(p_logits), jnp.zeros_like(n_logits)])
    # TODO(synk): the reference calls an external shuffle(instances, targets); a
    # shared permutation leaves the mean BCEWithLogits loss unchanged, so omitted.
    instance_loss = _bce_with_logits_mean(all_logits, all_targets)

    return out, att, instance_loss


# ----------------------------------------------------------------------------
# Parameter init (PyTorch nn.Linear default: U(-1/sqrt(fan_in), 1/sqrt(fan_in)))
# ----------------------------------------------------------------------------
def init_params(key, L, M, n_classes):
    ks = jax.random.split(key, 8)

    def lin(kw, kb, fan_in, shape_w, shape_b):
        bound = 1.0 / float(fan_in) ** 0.5
        w = jax.random.uniform(kw, shape_w, jnp.float32, -bound, bound)
        b = jax.random.uniform(kb, shape_b, jnp.float32, -bound, bound)
        return w, b

    V_w, V_b = lin(ks[0], ks[1], L, (L, M), (M,))          # V: Linear(L, M) (stored x@W form)
    w_w, w_b = lin(ks[2], ks[3], M, (1, M), (1,))          # w: Linear(M, 1) torch layout
    c_w, c_b = lin(ks[4], ks[5], L, (L, n_classes), (n_classes,))
    ic_w, ic_b = lin(ks[6], ks[7], L, (1, L), (1,))        # instance_classifier: Linear(L, 1)
    return {"V_w": V_w, "V_b": V_b, "w_w": w_w, "w_b": w_b,
            "c_w": c_w, "c_b": c_b, "ic_w": ic_w, "ic_b": ic_b}


# ----------------------------------------------------------------------------
# Pure-JAX reference (for correctness check of the Pallas path)
# ----------------------------------------------------------------------------
def _reference_forward(params, x, n_tiles, k_instance):
    bn, L = x.shape
    B = bn // n_tiles
    xb = x.reshape(B, n_tiles, L)
    h = jnp.tanh(xb @ params["V_w"] + params["V_b"])
    s = h @ params["w_w"].T + params["w_b"]                     # (B, T, 1)
    att = jax.nn.softmax(s, axis=1)
    agg = jnp.einsum("btl,bto->bl", xb, att)
    out = agg @ params["c_w"] + params["c_b"]
    inst = (xb @ params["ic_w"].T + params["ic_b"]).reshape(B, n_tiles)
    w_sq = att.reshape(B, n_tiles)
    _, pi = jax.lax.top_k(w_sq, k_instance)
    _, ni = jax.lax.top_k(-w_sq, k_instance)
    pl_ = jnp.take_along_axis(inst, pi, axis=1).reshape(-1)
    nl_ = jnp.take_along_axis(inst, ni, axis=1).reshape(-1)
    logits = jnp.concatenate([pl_, nl_])
    tgts = jnp.concatenate([jnp.ones_like(pl_), jnp.zeros_like(nl_)])
    return out, att, _bce_with_logits_mean(logits, tgts)


if __name__ == "__main__":
    L, M = 128, 64          # AttentionPooling(L, L // 2)
    n_classes = 4
    n_tiles = 128
    k_instance = 9
    B = 2

    key = jax.random.PRNGKey(0)
    k_param, k_input = jax.random.split(key)
    params = init_params(k_param, L, M, n_classes)
    x = jax.random.normal(k_input, (B * n_tiles, L), jnp.float32)   # (bn, c)

    fwd = jax.jit(lambda p, xx: attention_mil_forward(p, xx, n_tiles, k_instance))
    out, w, instance_loss = jax.block_until_ready(fwd(params, x))

    assert out.shape == (B, n_classes)
    assert w.shape == (B, n_tiles, 1)
    assert instance_loss.shape == ()
    assert bool(jnp.isfinite(instance_loss))
    assert bool(jnp.allclose(jnp.sum(w, axis=1), 1.0, atol=1e-4))

    # correctness vs pure-JAX reference
    r_out, r_w, r_loss = _reference_forward(params, x, n_tiles, k_instance)
    assert bool(jnp.allclose(out, r_out, atol=1e-3, rtol=1e-3))
    assert bool(jnp.allclose(w, r_w, atol=1e-3, rtol=1e-3))
    assert bool(jnp.allclose(instance_loss, r_loss, atol=1e-3, rtol=1e-3))

    print("KERNEL_OK")
</pallas_src>

<mosaic_0001>
module attributes {stable_mosaic.version = 11 : i64} {
  func.func @_attention_mil_kernel(%arg0: i32, %arg1: memref<1x128x128xf32, #tpu.memory_space<vmem>>, %arg2: memref<128x64xf32, #tpu.memory_space<vmem>>, %arg3: memref<1x64xf32, #tpu.memory_space<vmem>>, %arg4: memref<1x64xf32, #tpu.memory_space<vmem>>, %arg5: memref<1x1xf32, #tpu.memory_space<vmem>>, %arg6: memref<128x4xf32, #tpu.memory_space<vmem>>, %arg7: memref<1x4xf32, #tpu.memory_space<vmem>>, %arg8: memref<1x128xf32, #tpu.memory_space<vmem>>, %arg9: memref<1x1xf32, #tpu.memory_space<vmem>>, %arg10: memref<1x1x4xf32, #tpu.memory_space<vmem>>, %arg11: memref<1x128x1xf32, #tpu.memory_space<vmem>>, %arg12: memref<1x128x1xf32, #tpu.memory_space<vmem>>) attributes {dimension_semantics = [#tpu.dimension_semantics<parallel>], iteration_bounds = array<i64: 2>, scalar_prefetch = 0 : i64, scratch_operands = 0 : i64, tpu.core_type = #tpu.core_type<tc>, window_params = [{transform_indices = @transform_0, window_bounds = array<i64: 1, 128, 128>}, {pipeline_mode = #tpu.pipeline_mode<synchronous>, transform_indices = @transform_1, window_bounds = array<i64: 128, 64>}, {pipeline_mode = #tpu.pipeline_mode<synchronous>, transform_indices = @transform_2, window_bounds = array<i64: 1, 64>}, {pipeline_mode = #tpu.pipeline_mode<synchronous>, transform_indices = @transform_3, window_bounds = array<i64: 1, 64>}, {pipeline_mode = #tpu.pipeline_mode<synchronous>, transform_indices = @transform_4, window_bounds = array<i64: 1, 1>}, {pipeline_mode = #tpu.pipeline_mode<synchronous>, transform_indices = @transform_5, window_bounds = array<i64: 128, 4>}, {pipeline_mode = #tpu.pipeline_mode<synchronous>, transform_indices = @transform_6, window_bounds = array<i64: 1, 4>}, {pipeline_mode = #tpu.pipeline_mode<synchronous>, transform_indices = @transform_7, window_bounds = array<i64: 1, 128>}, {pipeline_mode = #tpu.pipeline_mode<synchronous>, transform_indices = @transform_8, window_bounds = array<i64: 1, 1>}, {transform_indices = @transform_9, window_bounds = array<i64: 1, 1, 4>}, {transform_indices = @transform_10, window_bounds = array<i64: 1, 128, 1>}, {transform_indices = @transform_11, window_bounds = array<i64: 1, 128, 1>}]} {
    %c0 = arith.constant 0 : index
    %c0_0 = arith.constant 0 : index
    %c0_1 = arith.constant 0 : index
    %0 = vector.load %arg1[%c0, %c0_0, %c0_1] : memref<1x128x128xf32, #tpu.memory_space<vmem>>, vector<1x128x128xf32>
    %1 = vector.shape_cast %0 : vector<1x128x128xf32> to vector<128x128xf32>
    %c0_2 = arith.constant 0 : index
    %c0_3 = arith.constant 0 : index
    %2 = vector.load %arg2[%c0_2, %c0_3] : memref<128x64xf32, #tpu.memory_space<vmem>>, vector<128x64xf32>
    %cst = arith.constant dense<0.000000e+00> : vector<128x64xf32>
    %3 = tpu.matmul %1, %2, %cst {dimension_numbers = #tpu.dot_dimension_numbers<[1], [0], [0], [1], [0, 0, 1, 1], [], []>} : vector<128x128xf32>, vector<128x64xf32>, vector<128x64xf32> -> vector<128x64xf32>
    %c0_4 = arith.constant 0 : index
    %c0_5 = arith.constant 0 : index
    %4 = vector.load %arg3[%c0_4, %c0_5] : memref<1x64xf32, #tpu.memory_space<vmem>>, vector<1x64xf32>
    %5 = vector.broadcast %4 : vector<1x64xf32> to vector<128x64xf32>
    %6 = arith.addf %3, %5 : vector<128x64xf32>
    %7 = math.tanh %6 : vector<128x64xf32>
    %c0_6 = arith.constant 0 : index
    %c0_7 = arith.constant 0 : index
    %8 = vector.load %arg4[%c0_6, %c0_7] : memref<1x64xf32, #tpu.memory_space<vmem>>, vector<1x64xf32>
    %9 = vector.broadcast %8 : vector<1x64xf32> to vector<128x64xf32>
    %10 = arith.mulf %7, %9 : vector<128x64xf32>
    %cst_8 = arith.constant dense<0.000000e+00> : vector<128xf32>
    %11 = vector.multi_reduction <add>, %10, %cst_8 [1] : vector<128x64xf32> to vector<128xf32>
    %12 = vector.shape_cast %11 : vector<128xf32> to vector<128x1xf32>
    %c0_9 = arith.constant 0 : index
    %c0_10 = arith.constant 0 : index
    %13 = vector.load %arg5[%c0_9, %c0_10] : memref<1x1xf32, #tpu.memory_space<vmem>>, vector<1x1xf32>
    %14 = vector.broadcast %13 : vector<1x1xf32> to vector<128x1xf32>
    %15 = arith.addf %12, %14 : vector<128x1xf32>
    %cst_11 = arith.constant dense<0xFF800000> : vector<1xf32>
    %16 = vector.multi_reduction <maximumf>, %15, %cst_11 [0] : vector<128x1xf32> to vector<1xf32>
    %17 = vector.shape_cast %16 : vector<1xf32> to vector<1x1xf32>
    %18 = vector.broadcast %17 : vector<1x1xf32> to vector<128x1xf32>
    %19 = arith.subf %15, %18 : vector<128x1xf32>
    %20 = math.exp %19 : vector<128x1xf32>
    %cst_12 = arith.constant dense<0.000000e+00> : vector<1xf32>
    %21 = vector.multi_reduction <add>, %20, %cst_12 [0] : vector<128x1xf32> to vector<1xf32>
    %22 = vector.shape_cast %21 : vector<1xf32> to vector<1x1xf32>
    %23 = vector.broadcast %22 : vector<1x1xf32> to vector<128x1xf32>
    %24 = arith.divf %20, %23 : vector<128x1xf32>
    %25 = vector.broadcast %24 : vector<128x1xf32> to vector<128x128xf32>
    %26 = arith.mulf %1, %25 : vector<128x128xf32>
    %cst_13 = arith.constant dense<0.000000e+00> : vector<128xf32>
    %27 = vector.multi_reduction <add>, %26, %cst_13 [0] : vector<128x128xf32> to vector<128xf32>
    %28 = vector.shape_cast %27 : vector<128xf32> to vector<1x128xf32>
    %c0_14 = arith.constant 0 : index
    %c0_15 = arith.constant 0 : index
    %29 = vector.load %arg6[%c0_14, %c0_15] : memref<128x4xf32, #tpu.memory_space<vmem>>, vector<128x4xf32>
    %cst_16 = arith.constant dense<0.000000e+00> : vector<1x4xf32>
    %30 = tpu.matmul %28, %29, %cst_16 {dimension_numbers = #tpu.dot_dimension_numbers<[1], [0], [0], [1], [0, 0, 1, 1], [], []>} : vector<1x128xf32>, vector<128x4xf32>, vector<1x4xf32> -> vector<1x4xf32>
    %c0_17 = arith.constant 0 : index
    %c0_18 = arith.constant 0 : index
    %31 = vector.load %arg7[%c0_17, %c0_18] : memref<1x4xf32, #tpu.memory_space<vmem>>, vector<1x4xf32>
    %32 = arith.addf %30, %31 : vector<1x4xf32>
    %33 = vector.shape_cast %32 : vector<1x4xf32> to vector<1x1x4xf32>
    %c0_19 = arith.constant 0 : index
    %c0_20 = arith.constant 0 : index
    %c0_21 = arith.constant 0 : index
    %34 = vector.load %arg10[%c0_19, %c0_20, %c0_21] : memref<1x1x4xf32, #tpu.memory_space<vmem>>, vector<1x1x4xf32>
    tpu.vector_store %arg10[%c0_19, %c0_20, %c0_21], %33 {strides = array<i32>} : memref<1x1x4xf32, #tpu.memory_space<vmem>>, vector<1x1x4xf32>,
    %c0_22 = arith.constant 0 : index
    %c0_23 = arith.constant 0 : index
    %35 = vector.load %arg8[%c0_22, %c0_23] : memref<1x128xf32, #tpu.memory_space<vmem>>, vector<1x128xf32>
    %36 = vector.broadcast %35 : vector<1x128xf32> to vector<128x128xf32>
    %37 = arith.mulf %1, %36 : vector<128x128xf32>
    %cst_24 = arith.constant dense<0.000000e+00> : vector<128xf32>
    %38 = vector.multi_reduction <add>, %37, %cst_24 [1] : vector<128x128xf32> to vector<128xf32>
    %39 = vector.shape_cast %38 : vector<128xf32> to vector<128x1xf32>
    %c0_25 = arith.constant 0 : index
    %c0_26 = arith.constant 0 : index
    %40 = vector.load %arg9[%c0_25, %c0_26] : memref<1x1xf32, #tpu.memory_space<vmem>>, vector<1x1xf32>
    %41 = vector.broadcast %40 : vector<1x1xf32> to vector<128x1xf32>
    %42 = arith.addf %39, %41 : vector<128x1xf32>
    %43 = vector.shape_cast %24 : vector<128x1xf32> to vector<1x128x1xf32>
    %c0_27 = arith.constant 0 : index
    %c0_28 = arith.constant 0 : index
    %c0_29 = arith.constant 0 : index
    %44 = vector.load %arg11[%c0_27, %c0_28, %c0_29] : memref<1x128x1xf32, #tpu.memory_space<vmem>>, vector<1x128x1xf32>
    tpu.vector_store %arg11[%c0_27, %c0_28, %c0_29], %43 {strides = array<i32>} : memref<1x128x1xf32, #tpu.memory_space<vmem>>, vector<1x128x1xf32>,
    %45 = vector.shape_cast %42 : vector<128x1xf32> to vector<1x128x1xf32>
    %c0_30 = arith.constant 0 : index
    %c0_31 = arith.constant 0 : index
    %c0_32 = arith.constant 0 : index
    %46 = vector.load %arg12[%c0_30, %c0_31, %c0_32] : memref<1x128x1xf32, #tpu.memory_space<vmem>>, vector<1x128x1xf32>
    tpu.vector_store %arg12[%c0_30, %c0_31, %c0_32], %45 {strides = array<i32>} : memref<1x128x1xf32, #tpu.memory_space<vmem>>, vector<1x128x1xf32>,
    return
  }
  func.func @transform_0(%arg0: i32) -> (i32, i32, i32) {
    %c0_i32 = arith.constant 0 : i32
    %c0_i32_0 = arith.constant 0 : i32
    %c0_i32_1 = arith.constant 0 : i32
    return %arg0, %c0_i32, %c0_i32_0 : i32, i32, i32
  }
  func.func @transform_1(%arg0: i32) -> (i32, i32) {
    %c0_i32 = arith.constant 0 : i32
    %c0_i32_0 = arith.constant 0 : i32
    %c0_i32_1 = arith.constant 0 : i32
    return %c0_i32, %c0_i32_0 : i32, i32
  }
  func.func @transform_2(%arg0: i32) -> (i32, i32) {
    %c0_i32 = arith.constant 0 : i32
    %c0_i32_0 = arith.constant 0 : i32
    %c0_i32_1 = arith.constant 0 : i32
    return %c0_i32, %c0_i32_0 : i32, i32
  }
  func.func @transform_3(%arg0: i32) -> (i32, i32) {
    %c0_i32 = arith.constant 0 : i32
    %c0_i32_0 = arith.constant 0 : i32
    %c0_i32_1 = arith.constant 0 : i32
    return %c0_i32, %c0_i32_0 : i32, i32
  }
  func.func @transform_4(%arg0: i32) -> (i32, i32) {
    %c0_i32 = arith.constant 0 : i32
    %c0_i32_0 = arith.constant 0 : i32
    %c0_i32_1 = arith.constant 0 : i32
    return %c0_i32, %c0_i32_0 : i32, i32
  }
  func.func @transform_5(%arg0: i32) -> (i32, i32) {
    %c0_i32 = arith.constant 0 : i32
    %c0_i32_0 = arith.constant 0 : i32
    %c0_i32_1 = arith.constant 0 : i32
    return %c0_i32, %c0_i32_0 : i32, i32
  }
  func.func @transform_6(%arg0: i32) -> (i32, i32) {
    %c0_i32 = arith.constant 0 : i32
    %c0_i32_0 = arith.constant 0 : i32
    %c0_i32_1 = arith.constant 0 : i32
    return %c0_i32, %c0_i32_0 : i32, i32
  }
  func.func @transform_7(%arg0: i32) -> (i32, i32) {
    %c0_i32 = arith.constant 0 : i32
    %c0_i32_0 = arith.constant 0 : i32
    %c0_i32_1 = arith.constant 0 : i32
    return %c0_i32, %c0_i32_0 : i32, i32
  }
  func.func @transform_8(%arg0: i32) -> (i32, i32) {
    %c0_i32 = arith.constant 0 : i32
    %c0_i32_0 = arith.constant 0 : i32
    %c0_i32_1 = arith.constant 0 : i32
    return %c0_i32, %c0_i32_0 : i32, i32
  }
  func.func @transform_9(%arg0: i32) -> (i32, i32, i32) {
    %c0_i32 = arith.constant 0 : i32
    %c0_i32_0 = arith.constant 0 : i32
    %c0_i32_1 = arith.constant 0 : i32
    return %arg0, %c0_i32, %c0_i32_0 : i32, i32, i32
  }
  func.func @transform_10(%arg0: i32) -> (i32, i32, i32) {
    %c0_i32 = arith.constant 0 : i32
    %c0_i32_0 = arith.constant 0 : i32
    %c0_i32_1 = arith.constant 0 : i32
    return %arg0, %c0_i32, %c0_i32_0 : i32, i32, i32
  }
  func.func @transform_11(%arg0: i32) -> (i32, i32, i32) {
    %c0_i32 = arith.constant 0 : i32
    %c0_i32_0 = arith.constant 0 : i32
    %c0_i32_1 = arith.constant 0 : i32
    return %arg0, %c0_i32, %c0_i32_0 : i32, i32, i32
  }
}

</mosaic_0001>

<bundles_post_ra>
// kernel: neg.2
= control target key start
LH: loop header
LB: loop body
LE: loop exit
PB: predicated region body
PF: predicated region fallthrough
CT: control target
= control target key end

     0   :  { %s24_s0 = inlined_call_operand.vmem [shape: f32[2,128], index: 0, kind: input, shape index: {}]   ;;  %s25_s1 = inlined_call_operand.vmem [shape: f32[2,128], index: 1, kind: output, shape index: {}]  }
   0x1   :  { %v2_v0 = vld [vmem:[%s24_s0] sm:$0x3] }
   0x2   :  { %v5_v1 = vxor.u32 2147483648, %v2_v0 }
   0x4   :  { %7 = vst [vmem:[%s25_s1] sm:$0x3] %v5_v1 }

// kernel: _lambda_.1
= control target key start
LH: loop header
LB: loop body
LE: loop exit
PB: predicated region body
PF: predicated region fallthrough
CT: control target
= control target key end

     0   :  { %s2243_s0 = inlined_call_operand.vmem [shape: f32[2,128,128], index: 0, kind: input, shape index: {}]   ;;  %s2244_s1 = inlined_call_operand.vmem [shape: f32[128,64], index: 1, kind: input, shape index: {}]   ;;  %s2245_s2 = inlined_call_operand.vmem [shape: f32[1,64], index: 2, kind: input, shape index: {}]   ;;  %s2246_s3 = inlined_call_operand.vmem [shape: f32[1,64], index: 3, kind: input, shape index: {}]   ;;  %s2247_s4 = inlined_call_operand.<no memory space> [shape: f32[1,1], index: 4, kind: input, shape index: {}]   ;;  %s2248_s5 = inlined_call_operand.vmem [shape: f32[128,4], index: 5, kind: input, shape index: {}]   ;;  %s2249_s6 = inlined_call_operand.vmem [shape: f32[1,4], index: 6, kind: input, shape index: {}]   ;;  %s2250_s7 = inlined_call_operand.vmem [shape: f32[1,128], index: 7, kind: input, shape index: {}]   ;;  %s2251_s9 = inlined_call_operand.hbm [shape: f32[2,1,4], index: 9, kind: output, shape index: {0}]   ;;  %s2252_s10 = inlined_call_operand.vmem [shape: f32[2,128,1], index: 10, kind: output, shape index: {1}]   ;;  %s2253_s11 = inlined_call_operand.vmem [shape: f32[2,128,1], index: 11, kind: output, shape index: {2}]   ;;  %s2254_s8 = inlined_call_operand.<no memory space> [shape: f32[1,1], index: 8, kind: input, shape index: {}]  }
   0x1   :  { %v17_v0 = vstv %s2247_s4  ;;  %v19_v1 = vstv %s2254_s8 }
   0x2   :  { %18 = vst [vmem:[#allocation2] sm:$0x1] %v17_v0  ;;  %20 = vst [vmem:[#allocation3] sm:$0x1] %v19_v1 }
   0x3   :  { %21 = vsyncpa [#allocation5], 0 }
   0x4   :  { %23 = vsyncpa [#allocation5 + $0x1], 0  ;;  %s1701_s21 = smov 0   ;;  %s1703_s22 = smov 0  }
   0x5   :  { %s1705_s23 = smov 0   ;;  %s1707_s24 = smov 0  }
   0x6 LB: > { %s1722_s4 = sadd.s32 4294967295, %s1629_s24   ;;  %s1298_s8 = sadd.s32 4294967294, %s1629_s24   ;;  %s1629_s24 = sphi %s1707_s24, %s2260_s24   ;;  %s1625_s23 = sphi %s1705_s23, %s2259_s23   ;;  %s1621_s22 = sphi %s1703_s22, %s2258_s22   ;;  %s1617_s21 = sphi %s1701_s21, %s2257_s21  }
   0x7   : > { %s1726_s25 = sadd.s32 1, %s1629_s24   ;;  %s230_s26 = sadd.s32 1, %s1625_s23 }
   0x8   : > { %s227_s27 = ssub.s32 %s1629_s24, %s1726_s25  ;;  %p240_p0 = scmp.ne.s32.totalorder %s1625_s23, %s1621_s22 }
   0x9   : > { %p228_p1 = scmp.eq.s32.totalorder %s227_s27, 0  ;;  %p241_p2 = scmp.eq.s32.totalorder %s1722_s4, 1 }
   0xa   : > { %p246_p3 = scmp.ne.s32.totalorder %s1621_s22, %s1617_s21  ;;  %p247_p4 = scmp.eq.s32.totalorder %s1298_s8, 1 }
   0xb   : > { %s1737_s28 = scalar_select %p228_p1, %s1625_s23, %s230_s26  }
   0xc   : > { %p1739_p5 = por %p241_p2, %p240_p0  ;;  %p1743_p6 = por %p247_p4, %p246_p3 }
   0xd   : > { %p1301_p7 = scmp.ge.s32.totalorder %s1629_s24, 1  ;;  %p349_p8 = scmp.lt.s32.totalorder %s1629_s24, 3 }
   0xf   : > { %p350_p9 = pnand %p1301_p7, %p349_p8 }
  0x10   : > { %p398_p10 = scmp.lt.s32.totalorder (!%p350_p9), %s1722_s4, 1 }
  0x11   : > { %353 = sbr.rel (%p350_p9) target bundleno = 926 (0x39e), region = 56 }
  0x16   : > { %v444_v2 = vld [vmem:[%s2244_s1 + $0x78] sm:$0xff]  ;;  %v443_v3 = vld [vmem:[%s2244_s1 + $0x70] sm:$0xff]  ;;  %v442_v4 = vld [vmem:[%s2244_s1 + $0x68] sm:$0xff]  ;;  %s399_s18 = scalar_select %p398_p10, %s1722_s4, 1  ;;  %vm636_vm0 = vcmask 523264   ;;  %vm708_vm1 = vcmask 7168  }
  0x17   : > { %1368 = vmatprep.subr.mxu0 %v444_v2  ;;  %v441_v5 = vld [vmem:[%s2244_s1 + $0x60] sm:$0xff]  ;;  %v440_v6 = vld [vmem:[%s2244_s1 + $0x58] sm:$0xff]  ;;  %v439_v8 = vld [vmem:[%s2244_s1 + $0x50] sm:$0xff]  ;;  %vm1633_vm2 = vmmov 0   ;;  %vm1052_vm3 = vcmask 24576  }
  0x18   : > { %1369 = vmatpush3.msra.mxu0 %v444_v2  ;;  %s1763_s8 = sshll.u32 %s399_s18, 7  ;;  %v438_v9 = vld [vmem:[%s2244_s1 + $0x48] sm:$0xff]  ;;  %v437_v10 = vld [vmem:[%s2244_s1 + $0x40] sm:$0xff]  ;;  %v436_v11 = vld [vmem:[%s2244_s1 + $0x38] sm:$0xff] }
  0x19   : > { %1370 = vmatprep.subr.mxu0 %v443_v3  ;;  %s1769_s12 = scalar_lea.vmem %s2243_s0, %s1763_s8  ;;  %v435_v12 = vld [vmem:[%s2244_s1 + $0x30] sm:$0xff]  ;;  %v434_v13 = vld [vmem:[%s2244_s1 + $0x28] sm:$0xff]  ;;  %v433_v14 = vld [vmem:[%s2244_s1 + $0x20] sm:$0xff]  ;;  %s2039_s27 = scalar_lea.vmem %s2252_s10, %s1763_s8 }
  0x1a   : > { %1371 = vmatpush3.msra.mxu0 %v443_v3  ;;  %v1775_v7 = vld [vmem:[%s1769_s12] sm:$0xff]  ;;  %v432_v15 = vld [vmem:[%s2244_s1 + $0x18] sm:$0xff]  ;;  %v431_v16 = vld [vmem:[%s2244_s1 + $0x10] sm:$0xff]  ;;  %s2166_s16 = scalar_lea.vmem %s2253_s11, %s1763_s8  ;;  %s382_s8 = sand.u32 1, %s1621_s22  }
  0x1b   : > { %1372 = vmatprep.subr.mxu0 %v442_v4  ;;  %1400 = vmatprep.mubr.f32.mxu0 %v1775_v7  ;;  %v430_v17 = vld [vmem:[%s2244_s1 + $0x8] sm:$0xff]  ;;  %v429_v18 = vld [vmem:[%s2244_s1] sm:$0xff]  ;;  %v1815_v20 = vld [vmem:[%s1769_s12 + $0x10] sm:$0xff]  ;;  %s383_s19 = scalar_lea.vmem [#allocation4], %s382_s8  ;;  %s1165_s14 = scalar_lea.sflag [#allocation5], %s382_s8 }
  0x1c   : > { %1373 = vmatpush3.msra.mxu0 %v442_v4  ;;  %v1812_v19 = vld [vmem:[%s1769_s12 + $0x8] sm:$0xff]  ;;  %v1820_v21 = vld [vmem:[%s1769_s12 + $0x18] sm:$0xff]  ;;  %v1823_v22 = vld [vmem:[%s1769_s12 + $0x20] sm:$0xff]  ;;  %s1187_s20 = sshll.u32 %s383_s19, 4  ;;  %s1188_s20 = int_to_ptr.vmem [resolvable:$true] %s1187_s20 }
  0x1d   : > { %1374 = vmatprep.subr.mxu0 %v441_v5  ;;  %v1828_v23 = vld [vmem:[%s1769_s12 + $0x28] sm:$0xff]  ;;  %v1831_v24 = vld [vmem:[%s1769_s12 + $0x30] sm:$0xff]  ;;  %v1836_v25 = vld [vmem:[%s1769_s12 + $0x38] sm:$0xff]  ;;  %s1569_s15 = scalar_lea.vmem %s1188_s20, 16 }
  0x1e   : > { %1375 = vmatpush3.msra.mxu0 %v441_v5  ;;  %v1839_v26 = vld [vmem:[%s1769_s12 + $0x40] sm:$0xff]  ;;  %v1844_v27 = vld [vmem:[%s1769_s12 + $0x48] sm:$0xff]  ;;  %v1847_v28 = vld [vmem:[%s1769_s12 + $0x50] sm:$0xff]  ;;  %p1570_p11 = scmp.ne.s32.totalorder %s1188_s20, %s1569_s15 }
  0x1f   : > { %1376 = vmatprep.subr.mxu0 %v440_v6  ;;  %v1852_v29 = vld [vmem:[%s1769_s12 + $0x58] sm:$0xff]  ;;  %v1855_v30 = vld [vmem:[%s1769_s12 + $0x60] sm:$0xff]  ;;  %v1860_v31 = vld [vmem:[%s1769_s12 + $0x68] sm:$0xff] }
  0x20   : > { %1377 = vmatpush3.msra.mxu0 %v440_v6  ;;  %v1863_v32 = vld [vmem:[%s1769_s12 + $0x70] sm:$0xff]  ;;  %v1868_v33 = vld [vmem:[%s1769_s12 + $0x78] sm:$0xff]  ;;  %v1874_v34 = vld [vmem:[%s2245_s2] ss:$0 sm:$0xff]  ;;  %s1313_s12 = sshll.u32 %s1722_s4, 4  ;;  %p1571_p12 = pnand %p1570_p11, %p1739_p5 }
  0x21   : > { %1378 = vmatprep.subr.mxu0 %v439_v8  ;;  %v1886_v50 = vld [vmem:[%s2246_s3] ss:$0 sm:$0xff]  ;;  %s2208_s13 = scalar_lea.hbm %s2251_s9, %s1313_s12  ;;  %s1634_s4 = smov [#allocation4]  }
  0x22   : > { %1379 = vmatpush3.msra.mxu0 %v439_v8  ;;  %p1572_p13 = pneg %p1571_p12 }
  0x23   : > { %1380 = vmatprep.subr.mxu0 %v438_v9 }
  0x24   : > { %1381 = vmatpush3.msra.mxu0 %v438_v9 }
  0x25   : > { %1382 = vmatprep.subr.mxu0 %v437_v10 }
  0x26   : > { %1383 = vmatpush3.msra.mxu0 %v437_v10 }
  0x27   : > { %1384 = vmatprep.subr.mxu0 %v436_v11 }
  0x28   : > { %1385 = vmatpush3.msra.mxu0 %v436_v11 }
  0x29   : > { %1386 = vmatprep.subr.mxu0 %v435_v12 }
  0x2a   : > { %1387 = vmatpush3.msra.mxu0 %v435_v12 }
  0x2b   : > { %1388 = vmatprep.subr.mxu0 %v434_v13 }
  0x2c   : > { %1389 = vmatpush3.msra.mxu0 %v434_v13 }
  0x2d   : > { %1390 = vmatprep.subr.mxu0 %v433_v14 }
  0x2e   : > { %1391 = vmatpush3.msra.mxu0 %v433_v14 }
  0x2f   : > { %1392 = vmatprep.subr.mxu0 %v432_v15 }
  0x30   : > { %1393 = vmatpush3.msra.mxu0 %v432_v15 }
  0x31   : > { %1394 = vmatprep.subr.mxu0 %v431_v16 }
  0x32   : > { %1395 = vmatpush3.msra.mxu0 %v431_v16 }
  0x33   : > { %1396 = vmatprep.subr.mxu0 %v430_v17 }
  0x34   : > { %1397 = vmatpush3.msra.mxu0 %v430_v17 }
  0x35   : > { %1398 = vmatprep.subr.mxu0 %v429_v18 }
  0x36   : > { %1399 = vmatpush3.msra.mxu0 %v429_v18 }
  0x37   : > { %1401 = vmatmul.mubr.f32.vlgmr.msra.gmra.mxu0 %v1812_v19 }
  0x38   : > { %1403 = vmatprep.mubr.f32.mxu0 %v1815_v20 }
  0x3b   : > { %1404 = vmatmul.mubr.f32.gmra.mxu0 %v1820_v21 }
  0x3c   : > { %1406 = vmatprep.mubr.f32.mxu0 %v1823_v22 }
  0x3f   : > { %1407 = vmatmul.mubr.f32.gmra.mxu0 %v1828_v23 }
  0x40   : > { %1409 = vmatprep.mubr.f32.mxu0 %v1831_v24 }
  0x43   : > { %1410 = vmatmul.mubr.f32.gmra.mxu0 %v1836_v25 }
  0x44   : > { %1412 = vmatprep.mubr.f32.mxu0 %v1839_v26 }
  0x47   : > { %1413 = vmatmul.mubr.f32.gmra.mxu0 %v1844_v27 }
  0x48   : > { %1415 = vmatprep.mubr.f32.mxu0 %v1847_v28 }
  0x4b   : > { %1416 = vmatmul.mubr.f32.gmra.mxu0 %v1852_v29 }
  0x4c   : > { %1418 = vmatprep.mubr.f32.mxu0 %v1855_v30 }
  0x4f   : > { %1419 = vmatmul.mubr.f32.gmra.mxu0 %v1860_v31 }
  0x50   : > { %1421 = vmatprep.mubr.f32.mxu0 %v1863_v32 }
  0x53   : > { %1422 = vmatmul.mubr.f32.gmra.mxu0 %v1868_v33 }
  0xf7   : > { %v1402_v35 = vpop.f32.mrf.mxu0 }
  0xf8   : > { %v524_v36 = vadd.f32 %v1402_v35, %v1874_v34 }
  0xf9   : > { %v518_v37 = vpop.f32.mrf.mxu0 }
  0xfa   : > { %1503 = vtanh.f32 %v524_v36  ;;  %v519_v38 = vadd.f32 %v1874_v34, %v518_v37 }
  0xfb   : > { %v1405_v39 = vpop.f32.mrf.mxu0 }
  0xfc   : > { %1505 = vtanh.f32 %v519_v38  ;;  %v534_v40 = vadd.f32 %v1405_v39, %v1874_v34 }
  0xfd   : > { %v528_v41 = vpop.f32.mrf.mxu0 }
  0xfe   : > { %1507 = vtanh.f32 %v534_v40  ;;  %v529_v42 = vadd.f32 %v1874_v34, %v528_v41 }
  0xff   : > { %v1408_v43 = vpop.f32.mrf.mxu0 }
 0x100   : > { %1509 = vtanh.f32 %v529_v42  ;;  %v544_v44 = vadd.f32 %v1408_v43, %v1874_v34 }
 0x101   : > { %v538_v45 = vpop.f32.mrf.mxu0 }
 0x102   : > { %1511 = vtanh.f32 %v544_v44  ;;  %v539_v46 = vadd.f32 %v1874_v34, %v538_v45 }
 0x103   : > { %v1411_v47 = vpop.f32.mrf.mxu0 }
 0x104   : > { %1513 = vtanh.f32 %v539_v46  ;;  %v554_v48 = vadd.f32 %v1411_v47, %v1874_v34 }
 0x105   : > { %v548_v49 = vpop.f32.mrf.mxu0 }
 0x106   : > { %1515 = vtanh.f32 %v554_v48  ;;  %v549_v51 = vadd.f32 %v1874_v34, %v548_v49 }
 0x107   : > { %v1504_v52 = vpop.eup %1503  ;;  %v1414_v53 = vpop.f32.mrf.mxu0 }
 0x108   : > { %1517 = vtanh.f32 %v549_v51  ;;  %v564_v54 = vadd.f32 %v1414_v53, %v1874_v34  ;;  %v621_v55 = vmul.f32 %v1504_v52, %v1886_v50 }
 0x109   : > { %v1506_v56 = vpop.eup %1505  ;;  %v558_v57 = vpop.f32.mrf.mxu0 }
 0x10a   : > { %1519 = vtanh.f32 %v564_v54  ;;  %v559_v58 = vadd.f32 %v1874_v34, %v558_v57  ;;  %v640_v59 = vsel %vm636_vm0, %v621_v55, 0.0  ;;  %v620_v60 = vmul.f32 %v1506_v56, %v1886_v50 }
 0x10b   : > { %v1508_v61 = vpop.eup %1507  ;;  %641 = vadd.xlane.f32.xlu0 %v640_v59  ;;  %v1417_v62 = vpop.f32.mrf.mxu0 }
 0x10c   : > { %1521 = vtanh.f32 %v559_v58  ;;  %v574_v63 = vadd.f32 %v1417_v62, %v1874_v34  ;;  %v623_v0 = vmul.f32 %v1508_v61, %v1886_v50  ;;  %v637_v3 = vsel %vm636_vm0, %v620_v60, 0.0 }
 0x10d   : > { %v1510_v1 = vpop.eup %1509  ;;  %v568_v2 = vpop.f32.mrf.mxu0 }
 0x10e   : > { %1523 = vtanh.f32 %v574_v63  ;;  %v569_v4 = vadd.f32 %v1874_v34, %v568_v2  ;;  %v646_v5 = vsel %vm636_vm0, %v623_v0, 0.0  ;;  %v622_v6 = vmul.f32 %v1510_v1, %v1886_v50 }
 0x10f   : > { %v1512_v8 = vpop.eup %1511  ;;  %647 = vadd.xlane.f32.xlu1 %v646_v5  ;;  %v1420_v9 = vpop.f32.mrf.mxu0  ;;  %638 = vadd.xlane.f32.xlu0 %v637_v3  ;;  %v1631_v5 = vmov 0  }
 0x110   : > { %1525 = vtanh.f32 %v569_v4  ;;  %v584_v10 = vadd.f32 %v1420_v9, %v1874_v34  ;;  %v625_v13 = vmul.f32 %v1512_v8, %v1886_v50  ;;  %v643_v15 = vsel %vm636_vm0, %v622_v6, 0.0  ;;  %1502 = vset.pattern.permute.xlu1 %v1631_v5  ;;  %1501 = vset.pattern.permute.xlu0 %v1631_v5 }
 0x111   : > { %v1514_v11 = vpop.eup %1513  ;;  %v578_v12 = vpop.f32.mrf.mxu0 }
 0x112   : > { %1527 = vtanh.f32 %v584_v10  ;;  %v579_v14 = vadd.f32 %v1874_v34, %v578_v12  ;;  %v624_v16 = vmul.f32 %v1514_v11, %v1886_v50  ;;  %v652_v39 = vsel %vm636_vm0, %v625_v13, 0.0 }
 0x113   : > { %v1516_v17 = vpop.eup %1515  ;;  %v1423_v18 = vpop.f32.mrf.mxu0  ;;  %644 = vadd.xlane.f32.xlu1 %v643_v15 }
 0x114   : > { %1529 = vtanh.f32 %v579_v14  ;;  %v594_v35 = vadd.f32 %v1423_v18, %v1874_v34  ;;  %v649_v36 = vsel %vm636_vm0, %v624_v16, 0.0  ;;  %v627_v42 = vmul.f32 %v1516_v17, %v1886_v50  ;;  %v1310_v16 = vld [vmem:[#allocation2] ss:$0 sm:$0xff] }
 0x115   : > { %v1518_v37 = vpop.eup %1517  ;;  %v588_v38 = vpop.f32.mrf.mxu0  ;;  %650 = vadd.xlane.f32.xlu0 %v649_v36 }
 0x116   : > { %1531 = vtanh.f32 %v594_v35  ;;  %v589_v40 = vadd.f32 %v1874_v34, %v588_v38  ;;  %v626_v41 = vmul.f32 %v1518_v37, %v1886_v50  ;;  %v658_v46 = vsel %vm636_vm0, %v627_v42, 0.0 }
 0x117   : > { %v1520_v43 = vpop.eup %1519  ;;  %653 = vadd.xlane.f32.xlu1 %v652_v39 }
 0x118   : > { %1533 = vtanh.f32 %v589_v40  ;;  %v655_v44 = vsel %vm636_vm0, %v626_v41, 0.0  ;;  %v629_v48 = vmul.f32 %v1520_v43, %v1886_v50 }
 0x119   : > { %v1522_v45 = vpop.eup %1521  ;;  %656 = vadd.xlane.f32.xlu0 %v655_v44 }
 0x11a   : > { %v628_v47 = vmul.f32 %v1522_v45, %v1886_v50  ;;  %v664_v52 = vsel %vm636_vm0, %v629_v48, 0.0 }
 0x11b   : > { %v1524_v49 = vpop.eup %1523  ;;  %659 = vadd.xlane.f32.xlu1 %v658_v46 }
 0x11c   : > { %v661_v34 = vsel %vm636_vm0, %v628_v47, 0.0  ;;  %v631_v54 = vmul.f32 %v1524_v49, %v1886_v50 }
 0x11d   : > { %v1526_v51 = vpop.eup %1525  ;;  %662 = vadd.xlane.f32.xlu0 %v661_v34 }
 0x11e   : > { %v630_v53 = vmul.f32 %v1526_v51, %v1886_v50  ;;  %v670_v58 = vsel %vm636_vm0, %v631_v54, 0.0 }
 0x11f   : > { %v1528_v55 = vpop.eup %1527  ;;  %665 = vadd.xlane.f32.xlu1 %v664_v52 }
 0x120   : > { %v667_v56 = vsel %vm636_vm0, %v630_v53, 0.0  ;;  %v633_v60 = vmul.f32 %v1528_v55, %v1886_v50 }
 0x121   : > { %v1530_v57 = vpop.eup %1529  ;;  %668 = vadd.xlane.f32.xlu0 %v667_v56 }
 0x122   : > { %v632_v59 = vmul.f32 %v1530_v57, %v1886_v50  ;;  %v676_v0 = vsel %vm636_vm0, %v633_v60, 0.0 }
 0x123   : > { %v1532_v61 = vpop.eup %1531  ;;  %671 = vadd.xlane.f32.xlu1 %v670_v58 }
 0x124   : > { %v673_v62 = vsel %vm636_vm0, %v632_v59, 0.0  ;;  %v635_v2 = vmul.f32 %v1532_v61, %v1886_v50 }
 0x125   : > { %v1534_v63 = vpop.eup %1533  ;;  %674 = vadd.xlane.f32.xlu0 %v673_v62 }
 0x126   : > { %v634_v1 = vmul.f32 %v1534_v63, %v1886_v50  ;;  %v682_v4 = vsel %vm636_vm0, %v635_v2, 0.0 }
 0x127   : > { %677 = vadd.xlane.f32.xlu1 %v676_v0 }
 0x128   : > { %v679_v3 = vsel %vm636_vm0, %v634_v1, 0.0 }
 0x129   : > { %680 = vadd.xlane.f32.xlu0 %v679_v3 }
 0x12b   : > { %683 = vadd.xlane.f32.xlu1 %v682_v4 }
 0x194   : > { %v642_v6 = vpop.xlane.xlu0 %641 }
 0x195   : > { %v1931_v35 = vadd.f32 %v1310_v16, %v642_v6 }
 0x197   : > { %v710_v49 = vsel %vm708_vm1, %v1931_v35, -inf }
 0x198   : > { %v648_v8 = vpop.xlane.xlu1 %647  ;;  %v639_v9 = vpop.xlane.xlu0 %638 }
 0x199   : > { %v1933_v36 = vadd.f32 %v1310_v16, %v648_v8  ;;  %v692_v42 = vadd.f32 %v1310_v16, %v639_v9 }
 0x19b   : > { %v712_v34 = vsel %vm708_vm1, %v1933_v36, -inf  ;;  %v709_v58 = vsel %vm708_vm1, %v692_v42, -inf }
 0x19c   : > { %v645_v10 = vpop.xlane.xlu1 %644 }
 0x19d   : > { %v694_v43 = vadd.f32 %v1310_v16, %v645_v10 }
 0x19e   : > { %v651_v11 = vpop.xlane.xlu0 %650 }
 0x19f   : > { %v1935_v37 = vadd.f32 %v1310_v16, %v651_v11  ;;  %v711_v59 = vsel %vm708_vm1, %v694_v43, -inf }
 0x1a0   : > { %v654_v12 = vpop.xlane.xlu1 %653 }
 0x1a1   : > { %v1929_v18 = vadd.f32 %v1310_v16, %v654_v12  ;;  %v713_v51 = vsel %vm708_vm1, %v1935_v37, -inf }
 0x1a2   : > { %v657_v13 = vpop.xlane.xlu0 %656  ;;  %v714_v3 = vmax.f32 %v709_v58, %v713_v51 }
 0x1a3   : > { %v1937_v38 = vadd.f32 %v1310_v16, %v657_v13  ;;  %v715_v46 = vsel %vm708_vm1, %v1929_v18, -inf }
 0x1a4   : > { %v660_v14 = vpop.xlane.xlu1 %659  ;;  %v716_v60 = vmax.f32 %v710_v49, %v715_v46 }
 0x1a5   : > { %v1939_v40 = vadd.f32 %v1310_v16, %v660_v14  ;;  %v717_v52 = vsel %vm708_vm1, %v1937_v38, -inf }
 0x1a6   : > { %v663_v15 = vpop.xlane.xlu0 %662  ;;  %v718_v4 = vmax.f32 %v711_v59, %v717_v52 }
 0x1a7   : > { %v1943_v44 = vadd.f32 %v1310_v16, %v663_v15  ;;  %v719_v54 = vsel %vm708_vm1, %v1939_v40, -inf }
 0x1a8   : > { %v666_v50 = vpop.xlane.xlu1 %665  ;;  %v720_v5 = vmax.f32 %v712_v34, %v719_v54 }
 0x1a9   : > { %v1941_v41 = vadd.f32 %v1310_v16, %v666_v50  ;;  %v721_v61 = vsel %vm708_vm1, %v1943_v44, -inf }
 0x1aa   : > { %v669_v17 = vpop.xlane.xlu0 %668  ;;  %v722_v12 = vmax.f32 %v714_v3, %v721_v61 }
 0x1ab   : > { %v1947_v47 = vadd.f32 %v1310_v16, %v669_v17  ;;  %v723_v55 = vsel %vm708_vm1, %v1941_v41, -inf }
 0x1ac   : > { %v672_v39 = vpop.xlane.xlu1 %671  ;;  %v724_v6 = vmax.f32 %v716_v60, %v723_v55 }
 0x1ad   : > { %v1949_v48 = vadd.f32 %v1310_v16, %v672_v39  ;;  %v725_v63 = vsel %vm708_vm1, %v1947_v47, -inf }
 0x1ae   : > { %v675_v45 = vpop.xlane.xlu0 %674  ;;  %v726_v13 = vmax.f32 %v718_v4, %v725_v63 }
 0x1af   : > { %v1963_v56 = vadd.f32 %v1310_v16, %v675_v45  ;;  %v727_v0 = vsel %vm708_vm1, %v1949_v48, -inf }
 0x1b0   : > { %v678_v53 = vpop.xlane.xlu1 %677  ;;  %v728_v14 = vmax.f32 %v720_v5, %v727_v0 }
 0x1b1   : > { %v1965_v57 = vadd.f32 %v1310_v16, %v678_v53  ;;  %v729_v9 = vsel %vm708_vm1, %v1963_v56, -inf }
 0x1b2   : > { %v681_v62 = vpop.xlane.xlu0 %680  ;;  %v730_v17 = vmax.f32 %v722_v12, %v729_v9 }
 0x1b3   : > { %v731_v1 = vsel %vm708_vm1, %v1965_v57, -inf  ;;  %v1977_v2 = vadd.f32 %v1310_v16, %v681_v62 }
 0x1b4   : > { %v684_v8 = vpop.xlane.xlu1 %683  ;;  %v732_v15 = vmax.f32 %v724_v6, %v731_v1 }
 0x1b5   : > { %v733_v10 = vsel %vm708_vm1, %v1977_v2, -inf  ;;  %v1983_v11 = vadd.f32 %v1310_v16, %v684_v8 }
 0x1b6   : > { %v734_v39 = vmax.f32 %v726_v13, %v733_v10  ;;  %v737_v46 = vmax.f32 %v730_v17, %v732_v15 }
 0x1b7   : > { %v735_v50 = vsel %vm708_vm1, %v1983_v11, -inf }
 0x1b8   : > { %v736_v45 = vmax.f32 %v728_v14, %v735_v50 }
 0x1ba   : > { %v738_v49 = vmax.f32 %v734_v39, %v736_v45 }
 0x1bc   : > { %v739_v34 = vmax.f32 %v737_v46, %v738_v49 }
 0x1be   : > { %v740_v51 = vrot.slane %v739_v34, 4 }
 0x1c0   : > { %v741_v52 = vmax.f32 %v739_v34, %v740_v51 }
 0x1c2   : > { %v742_v53 = vrot.slane %v741_v52, 2 }
 0x1c4   : > { %v743_v54 = vmax.f32 %v741_v52, %v742_v53 }
 0x1c6   : > { %v744_v55 = vrot.slane %v743_v54, 1 }
 0x1c8   : > { %v745_v16 = vmax.f32 %v743_v54, %v744_v55 }
 0x1ca   : > { %v746_v58 = vsub.f32 %v692_v42, %v745_v16  ;;  %v747_v59 = vsub.f32 %v1931_v35, %v745_v16  ;;  %v748_v60 = vsub.f32 %v694_v43, %v745_v16  ;;  %v749_v61 = vsub.f32 %v1933_v36, %v745_v16 }
 0x1cb   : > { %v750_v62 = vsub.f32 %v1935_v37, %v745_v16  ;;  %v751_v1 = vsub.f32 %v1929_v18, %v745_v16  ;;  %v752_v5 = vsub.f32 %v1937_v38, %v745_v16  ;;  %v753_v42 = vsub.f32 %v1939_v40, %v745_v16 }
 0x1cc   : > { %v762_v63 = vmul.f32 1.442695, %v746_v58  ;;  %v764_v0 = vmul.f32 1.442695, %v747_v59  ;;  %v766_v3 = vmul.f32 1.442695, %v748_v60  ;;  %v754_v36 = vsub.f32 %v1943_v44, %v745_v16 }
 0x1cd   : > { %v768_v4 = vmul.f32 1.442695, %v749_v61  ;;  %v770_v6 = vmul.f32 1.442695, %v750_v62  ;;  %v772_v35 = vmul.f32 1.442695, %v751_v1  ;;  %v755_v43 = vsub.f32 %v1941_v41, %v745_v16 }
 0x1ce   : > { %1535 = vpow2.f32 %v762_v63  ;;  %v774_v37 = vmul.f32 1.442695, %v752_v5  ;;  %v776_v18 = vmul.f32 1.442695, %v753_v42  ;;  %v756_v8 = vsub.f32 %v1947_v47, %v745_v16 }
 0x1cf   : > { %1537 = vpow2.f32 %v764_v0  ;;  %v778_v9 = vmul.f32 1.442695, %v754_v36  ;;  %v757_v38 = vsub.f32 %v1949_v48, %v745_v16  ;;  %v780_v10 = vmul.f32 1.442695, %v755_v43 }
 0x1d0   : > { %1539 = vpow2.f32 %v766_v3  ;;  %v758_v40 = vsub.f32 %v1963_v56, %v745_v16  ;;  %v782_v44 = vmul.f32 1.442695, %v756_v8  ;;  %v759_v47 = vsub.f32 %v1965_v57, %v745_v16 }
 0x1d1   : > { %1541 = vpow2.f32 %v768_v4  ;;  %v784_v15 = vmul.f32 1.442695, %v757_v38  ;;  %v760_v56 = vsub.f32 %v1977_v2, %v745_v16  ;;  %v761_v57 = vsub.f32 %v1983_v11, %v745_v16 }
 0x1d2   : > { %1543 = vpow2.f32 %v770_v6  ;;  %v786_v39 = vmul.f32 1.442695, %v758_v40  ;;  %v788_v34 = vmul.f32 1.442695, %v759_v47 }
 0x1d3   : > { %1545 = vpow2.f32 %v772_v35  ;;  %v790_v2 = vmul.f32 1.442695, %v760_v56  ;;  %v792_v59 = vmul.f32 1.442695, %v761_v57 }
 0x1d4   : > { %1547 = vpow2.f32 %v774_v37 }
 0x1d5   : > { %1549 = vpow2.f32 %v776_v18 }
 0x1d6   : > { %1551 = vpow2.f32 %v778_v9 }
 0x1d7   : > { %1553 = vpow2.f32 %v780_v10 }
 0x1d8   : > { %1555 = vpow2.f32 %v782_v44 }
 0x1d9   : > { %1557 = vpow2.f32 %v784_v15 }
 0x1da   : > { %1559 = vpow2.f32 %v786_v39 }
 0x1db   : > { %v1997_v12 = vpop.eup %1535  ;;  %1561 = vpow2.f32 %v788_v34 }
 0x1dc   : > { %v2000_v13 = vpop.eup %1537  ;;  %v794_v41 = vsel %vm708_vm1, %v1997_v12, 0.0  ;;  %1563 = vpow2.f32 %v790_v2 }
 0x1dd   : > { %v2004_v14 = vpop.eup %1539  ;;  %v795_v48 = vsel %vm708_vm1, %v2000_v13, 0.0  ;;  %1565 = vpow2.f32 %v792_v59 }
 0x1de   : > { %v2009_v50 = vpop.eup %1541  ;;  %v796_v17 = vadd.f32 %v795_v48, %v794_v41  ;;  %v797_v45 = vsel %vm708_vm1, %v2004_v14, 0.0 }
 0x1df   : > { %v2014_v46 = vpop.eup %1543  ;;  %v799_v51 = vsel %vm708_vm1, %v2009_v50, 0.0 }
 0x1e0   : > { %v798_v49 = vadd.f32 %v797_v45, %v796_v17  ;;  %v2019_v52 = vpop.eup %1545  ;;  %v801_v54 = vsel %vm708_vm1, %v2014_v46, 0.0 }
 0x1e1   : > { %v1548_v55 = vpop.eup %1547  ;;  %v803_v11 = vsel %vm708_vm1, %v2019_v52, 0.0 }
 0x1e2   : > { %v800_v53 = vadd.f32 %v799_v51, %v798_v49  ;;  %v1550_v16 = vpop.eup %1549  ;;  %v805_v61 = vsel %vm708_vm1, %v1548_v55, 0.0 }
 0x1e3   : > { %v1552_v62 = vpop.eup %1551  ;;  %v807_v0 = vsel %vm708_vm1, %v1550_v16, 0.0 }
 0x1e4   : > { %v802_v58 = vadd.f32 %v801_v54, %v800_v53  ;;  %v1554_v1 = vpop.eup %1553  ;;  %v809_v4 = vsel %vm708_vm1, %v1552_v62, 0.0 }
 0x1e5   : > { %v1556_v5 = vpop.eup %1555  ;;  %v811_v42 = vsel %vm708_vm1, %v1554_v1, 0.0 }
 0x1e6   : > { %v804_v60 = vadd.f32 %v803_v11, %v802_v58  ;;  %v1558_v35 = vpop.eup %1557  ;;  %v813_v37 = vsel %vm708_vm1, %v1556_v5, 0.0 }
 0x1e7   : > { %v1560_v43 = vpop.eup %1559  ;;  %v815_v8 = vsel %vm708_vm1, %v1558_v35, 0.0 }
 0x1e8   : > { %v806_v63 = vadd.f32 %v805_v61, %v804_v60  ;;  %v1562_v9 = vpop.eup %1561  ;;  %v817_v10 = vsel %vm708_vm1, %v1560_v43, 0.0 }
 0x1e9   : > { %v1564_v40 = vpop.eup %1563  ;;  %v819_v41 = vsel %vm708_vm1, %v1562_v9, 0.0 }
 0x1ea   : > { %v808_v3 = vadd.f32 %v807_v0, %v806_v63  ;;  %v1566_v47 = vpop.eup %1565  ;;  %v821_v48 = vsel %vm708_vm1, %v1564_v40, 0.0 }
 0x1eb   : > { %v823_v56 = vsel %vm708_vm1, %v1566_v47, 0.0 }
 0x1ec   : > { %v810_v6 = vadd.f32 %v809_v4, %v808_v3  ;;  %v978_v4 = vld [vmem:[%s2248_s5 + $0x68] sm:$0xff] }
 0x1ee   : > { %v812_v36 = vadd.f32 %v811_v42, %v810_v6  ;;  %v976_v6 = vld [vmem:[%s2248_s5 + $0x58] sm:$0xff]  ;;  %v975_v42 = vld [vmem:[%s2248_s5 + $0x50] sm:$0xff] }
 0x1f0   : > { %v814_v18 = vadd.f32 %v813_v37, %v812_v36  ;;  %v973_v36 = vld [vmem:[%s2248_s5 + $0x40] sm:$0xff]  ;;  %v972_v37 = vld [vmem:[%s2248_s5 + $0x38] sm:$0xff] }
 0x1f2   : > { %v816_v38 = vadd.f32 %v815_v8, %v814_v18  ;;  %v970_v18 = vld [vmem:[%s2248_s5 + $0x28] sm:$0xff]  ;;  %v969_v8 = vld [vmem:[%s2248_s5 + $0x20] sm:$0xff] }
 0x1f4   : > { %v818_v44 = vadd.f32 %v817_v10, %v816_v38  ;;  %v967_v38 = vld [vmem:[%s2248_s5 + $0x10] sm:$0xff]  ;;  %v1311_v10 = vld [vmem:[%s2250_s7] ss:$0 sm:$0xff] }
 0x1f6   : > { %v820_v15 = vadd.f32 %v819_v41, %v818_v44  ;;  %v966_v44 = vld [vmem:[%s2248_s5 + $0x8] sm:$0xff]  ;;  %v1063_v41 = vmul.f32 %v1311_v10, %v1815_v20 }
 0x1f8   : > { %v822_v17 = vadd.f32 %v821_v48, %v820_v15  ;;  %v1065_v15 = vmul.f32 %v1311_v10, %v1823_v22  ;;  %v1067_v48 = vmul.f32 %v1311_v10, %v1831_v24 }
 0x1fa   : > { %v824_v39 = vadd.f32 %v823_v56, %v822_v17  ;;  %v1069_v17 = vmul.f32 %v1311_v10, %v1839_v26  ;;  %v1061_v56 = vmul.f32 %v1311_v10, %v1775_v7 }
 0x1fc   : > { %v825_v45 = vrot.slane %v824_v39, 4 }
 0x1fe   : > { %v826_v49 = vadd.f32 %v825_v45, %v824_v39  ;;  %v1071_v39 = vmul.f32 %v1311_v10, %v1847_v28  ;;  %v1064_v45 = vmul.f32 %v1311_v10, %v1820_v21 }
 0x200   : > { %v827_v57 = vrot.slane %v826_v49, 2 }
 0x202   : > { %v828_v34 = vadd.f32 %v827_v57, %v826_v49  ;;  %v1073_v49 = vmul.f32 %v1311_v10, %v1855_v30  ;;  %v1066_v57 = vmul.f32 %v1311_v10, %v1828_v23 }
 0x204   : > { %v829_v51 = vrot.slane %v828_v34, 1 }
 0x206   : > { %v830_v53 = vadd.f32 %v829_v51, %v828_v34  ;;  %v1075_v34 = vmul.f32 %v1311_v10, %v1863_v32  ;;  %v1068_v51 = vmul.f32 %v1311_v10, %v1836_v25 }
 0x208   : > { %1567 = vrcp.f32 %v830_v53  ;;  %v1070_v53 = vmul.f32 %v1311_v10, %v1844_v27 }
 0x215   : > { %v1568_v2 = vpop.eup %1567 }
 0x216   : > { %v833_v54 = vmul.f32 %v1568_v2, %v2000_v13  ;;  %v832_v58 = vmul.f32 %v1568_v2, %v1997_v12  ;;  %v834_v59 = vmul.f32 %v1568_v2, %v2004_v14  ;;  %v841_v11 = vmul.f32 %v1568_v2, %v1554_v1 }
 0x217   : > { %v835_v60 = vmul.f32 %v1568_v2, %v2009_v50  ;;  %v843_v61 = vmul.f32 %v1568_v2, %v1558_v35  ;;  %v836_v63 = vmul.f32 %v1568_v2, %v2014_v46  ;;  %v845_v0 = vmul.f32 %v1568_v2, %v1562_v9  ;;  %v974_v35 = vld [vmem:[%s2248_s5 + $0x48] sm:$0xff]  ;;  %v968_v9 = vld [vmem:[%s2248_s5 + $0x18] sm:$0xff] }
 0x218   : > { %855 = vperm.xlu1 %1502, %v833_v54   ;;  %1133 = vst.msk [vmem:[%s2039_s27 + $0x8] sm:$0xff] %vm708_vm1, %v833_v54  ;;  %850 = vperm.xlu0 %1501, %v832_v58   ;;  %1132 = vst.msk [vmem:[%s2039_s27] sm:$0xff] %vm708_vm1, %v832_v58  ;;  %v837_v12 = vmul.f32 %v1568_v2, %v2019_v52  ;;  %v847_v13 = vmul.f32 %v1568_v2, %v1566_v47  ;;  %v965_v47 = vld [vmem:[%s2248_s5] sm:$0xff] }
 0x219   : > { %1134 = vst.msk [vmem:[%s2039_s27 + $0x10] sm:$0xff] %vm708_vm1, %v834_v59  ;;  %1141 = vst.msk [vmem:[%s2039_s27 + $0x48] sm:$0xff] %vm708_vm1, %v841_v11  ;;  %v838_v14 = vmul.f32 %v1568_v2, %v1548_v55  ;;  %v839_v50 = vmul.f32 %v1568_v2, %v1550_v16  ;;  %v840_v46 = vmul.f32 %v1568_v2, %v1552_v62  ;;  %v980_v55 = vld [vmem:[%s2248_s5 + $0x78] sm:$0xff]  ;;  %v1632_v16 = vmov 0.0   ;;  %v979_v62 = vld [vmem:[%s2248_s5 + $0x70] sm:$0xff] }
 0x21a   : > { %1135 = vst.msk [vmem:[%s2039_s27 + $0x18] sm:$0xff] %vm708_vm1, %v835_v60  ;;  %1143 = vst.msk [vmem:[%s2039_s27 + $0x58] sm:$0xff] %vm708_vm1, %v843_v61  ;;  %v842_v1 = vmul.f32 %v1568_v2, %v1556_v5  ;;  %v844_v3 = vmul.f32 %v1568_v2, %v1560_v43  ;;  %v846_v52 = vmul.f32 %v1568_v2, %v1564_v40  ;;  %1424 = vmatprep.subr.mxu1 %v1632_v16  ;;  %v977_v5 = vld [vmem:[%s2248_s5 + $0x60] sm:$0xff]  ;;  %v971_v43 = vld [vmem:[%s2248_s5 + $0x30] sm:$0xff] }
 0x21b   : > { %1136 = vst.msk [vmem:[%s2039_s27 + $0x20] sm:$0xff] %vm708_vm1, %v836_v63  ;;  %1145 = vst.msk [vmem:[%s2039_s27 + $0x68] sm:$0xff] %vm708_vm1, %v845_v0  ;;  %1425 = vmatpush3.msra.mxu1 %v980_v55  ;;  %1456 = vmatprep.mubr.msk.f32.mxu1 %vm1633_vm2, %v1632_v16  ;;  %v1062_v40 = vmul.f32 %v1311_v10, %v1812_v19  ;;  %v1072_v2 = vmul.f32 %v1311_v10, %v1852_v29 }
 0x21c   : > { %1137 = vst.msk [vmem:[%s2039_s27 + $0x28] sm:$0xff] %vm708_vm1, %v837_v12  ;;  %1147 = vst.msk [vmem:[%s2039_s27 + $0x78] sm:$0xff] %vm708_vm1, %v847_v13  ;;  %860 = vperm.xlu1 %1502, %v834_v59   ;;  %895 = vperm.xlu0 %1501, %v841_v11   ;;  %v1074_v54 = vmul.f32 %v1311_v10, %v1860_v31  ;;  %v1076_v58 = vmul.f32 %v1311_v10, %v1868_v33 }
 0x21d   : > { %1138 = vst.msk [vmem:[%s2039_s27 + $0x30] sm:$0xff] %vm708_vm1, %v838_v14  ;;  %1139 = vst.msk [vmem:[%s2039_s27 + $0x38] sm:$0xff] %vm708_vm1, %v839_v50  ;;  %1426 = vmatprep.subr.mxu1 %v1632_v16 }
 0x21e   : > { %1140 = vst.msk [vmem:[%s2039_s27 + $0x40] sm:$0xff] %vm708_vm1, %v840_v46  ;;  %1142 = vst.msk [vmem:[%s2039_s27 + $0x50] sm:$0xff] %vm708_vm1, %v842_v1  ;;  %1427 = vmatpush3.msra.mxu1 %v979_v62 }
 0x21f   : > { %1144 = vst.msk [vmem:[%s2039_s27 + $0x60] sm:$0xff] %vm708_vm1, %v844_v3  ;;  %1146 = vst.msk [vmem:[%s2039_s27 + $0x70] sm:$0xff] %vm708_vm1, %v846_v52  ;;  %1428 = vmatprep.subr.mxu1 %v1632_v16 }
 0x220   : > { %865 = vperm.xlu1 %1502, %v835_v60   ;;  %905 = vperm.xlu0 %1501, %v843_v61  }
 0x221   : > { %1429 = vmatpush3.msra.mxu1 %v978_v4 }
 0x222   : > { %1430 = vmatprep.subr.mxu1 %v1632_v16 }
 0x223   : > { %1431 = vmatpush3.msra.mxu1 %v977_v5 }
 0x224   : > { %870 = vperm.xlu1 %1502, %v836_v63   ;;  %915 = vperm.xlu0 %1501, %v845_v0  }
 0x225   : > { %1432 = vmatprep.subr.mxu1 %v1632_v16 }
 0x226   : > { %1433 = vmatpush3.msra.mxu1 %v976_v6 }
 0x227   : > { %1434 = vmatprep.subr.mxu1 %v1632_v16 }
 0x228   : > { %875 = vperm.xlu1 %1502, %v837_v12   ;;  %925 = vperm.xlu0 %1501, %v847_v13  }
 0x229   : > { %1435 = vmatpush3.msra.mxu1 %v975_v42 }
 0x22a   : > { %1436 = vmatprep.subr.mxu1 %v1632_v16 }
 0x22b   : > { %1437 = vmatpush3.msra.mxu1 %v974_v35 }
 0x22c   : > { %880 = vperm.xlu1 %1502, %v838_v14   ;;  %1438 = vmatprep.subr.mxu1 %v1632_v16 }
 0x22d   : > { %1439 = vmatpush3.msra.mxu1 %v973_v36 }
 0x22e   : > { %1440 = vmatprep.subr.mxu1 %v1632_v16 }
 0x22f   : > { %1441 = vmatpush3.msra.mxu1 %v972_v37 }
 0x230   : > { %885 = vperm.xlu1 %1502, %v839_v50   ;;  %1442 = vmatprep.subr.mxu1 %v1632_v16 }
 0x231   : > { %1443 = vmatpush3.msra.mxu1 %v971_v43 }
 0x232   : > { %1444 = vmatprep.subr.mxu1 %v1632_v16 }
 0x233   : > { %1445 = vmatpush3.msra.mxu1 %v970_v18 }
 0x234   : > { %890 = vperm.xlu1 %1502, %v840_v46   ;;  %1446 = vmatprep.subr.mxu1 %v1632_v16 }
 0x235   : > { %1447 = vmatpush3.msra.mxu1 %v969_v8 }
 0x236   : > { %1448 = vmatprep.subr.mxu1 %v1632_v16 }
 0x237   : > { %1449 = vmatpush3.msra.mxu1 %v968_v9 }
 0x238   : > { %900 = vperm.xlu1 %1502, %v842_v1   ;;  %1450 = vmatprep.subr.mxu1 %v1632_v16 }
 0x239   : > { %1451 = vmatpush3.msra.mxu1 %v967_v38 }
 0x23a   : > { %1452 = vmatprep.subr.mxu1 %v1632_v16 }
 0x23b   : > { %1453 = vmatpush3.msra.mxu1 %v966_v44 }
 0x23c   : > { %910 = vperm.xlu1 %1502, %v844_v3   ;;  %1454 = vmatprep.subr.mxu1 %v1632_v16 }
 0x23d   : > { %1455 = vmatpush3.msra.mxu1 %v965_v47 }
 0x240   : > { %920 = vperm.xlu1 %1502, %v846_v52  }
 0x247   : > { %1079 = vadd.xlane.f32.xlu0 %v1062_v40 }
 0x24b   : > { %1081 = vadd.xlane.f32.xlu0 %v1063_v41 }
 0x24f   : > { %1085 = vadd.xlane.f32.xlu0 %v1065_v15 }
 0x253   : > { %1089 = vadd.xlane.f32.xlu0 %v1067_v48 }
 0x257   : > { %1093 = vadd.xlane.f32.xlu0 %v1069_v17 }
 0x25b   : > { %1097 = vadd.xlane.f32.xlu0 %v1071_v39 }
 0x25f   : > { %1101 = vadd.xlane.f32.xlu0 %v1073_v49  ;;  %v1312_v49 = vld [vmem:[#allocation3] ss:$0 sm:$0xff] }
 0x263   : > { %1105 = vadd.xlane.f32.xlu0 %v1075_v34 }
 0x264   : > { %1077 = vadd.xlane.f32.xlu1 %v1061_v56 }
 0x268   : > { %1083 = vadd.xlane.f32.xlu1 %v1064_v45 }
 0x26c   : > { %1087 = vadd.xlane.f32.xlu1 %v1066_v57 }
 0x270   : > { %1091 = vadd.xlane.f32.xlu1 %v1068_v51 }
 0x274   : > { %1095 = vadd.xlane.f32.xlu1 %v1070_v53 }
 0x278   : > { %1099 = vadd.xlane.f32.xlu1 %v1072_v2 }
 0x27c   : > { %1103 = vadd.xlane.f32.xlu1 %v1074_v54 }
 0x280   : > { %1107 = vadd.xlane.f32.xlu1 %v1076_v58 }
 0x293   : > { %v856_v59 = vpop.permute.xlu1 %855  ;;  %v851_v61 = vpop.permute.xlu0 %850 }
 0x294   : > { %v929_v0 = vmul.f32 %v856_v59, %v1812_v19  ;;  %v928_v12 = vmul.f32 %v851_v61, %v1775_v7 }
 0x296   : > { %v944_v50 = vadd.f32 %v929_v0, %v928_v12 }
 0x297   : > { %v861_v11 = vpop.permute.xlu1 %860  ;;  %v896_v62 = vpop.permute.xlu0 %895 }
 0x298   : > { %v930_v13 = vmul.f32 %v861_v11, %v1815_v20 }
 0x29a   : > { %v945_v1 = vadd.f32 %v944_v50, %v930_v13 }
 0x29b   : > { %v866_v60 = vpop.permute.xlu1 %865  ;;  %v906_v42 = vpop.permute.xlu0 %905 }
 0x29c   : > { %v931_v46 = vmul.f32 %v866_v60, %v1820_v21 }
 0x29e   : > { %v946_v55 = vadd.f32 %v945_v1, %v931_v46 }
 0x29f   : > { %v871_v63 = vpop.permute.xlu1 %870  ;;  %v916_v8 = vpop.permute.xlu0 %915 }
 0x2a0   : > { %v932_v3 = vmul.f32 %v871_v63, %v1823_v22  ;;  %v937_v22 = vmul.f32 %v896_v62, %v1844_v27  ;;  %v941_v40 = vmul.f32 %v916_v8, %v1860_v31 }
 0x2a2   : > { %v947_v4 = vadd.f32 %v946_v55, %v932_v3 }
 0x2a3   : > { %v876_v14 = vpop.permute.xlu1 %875 }
 0x2a4   : > { %v933_v16 = vmul.f32 %v876_v14, %v1828_v23 }
 0x2a6   : > { %v948_v6 = vadd.f32 %v947_v4, %v933_v16 }
 0x2a7   : > { %v881_v52 = vpop.permute.xlu1 %880 }
 0x2a8   : > { %v934_v5 = vmul.f32 %v881_v52, %v1831_v24  ;;  %v939_v24 = vmul.f32 %v906_v42, %v1852_v29 }
 0x2aa   : > { %v949_v20 = vadd.f32 %v948_v6, %v934_v5 }
 0x2ab   : > { %v886_v19 = vpop.permute.xlu1 %885 }
 0x2ac   : > { %v935_v7 = vmul.f32 %v886_v19, %v1836_v25 }
 0x2ae   : > { %v950_v36 = vadd.f32 %v949_v20, %v935_v7  ;;  %v981_v20 = vld [vmem:[%s2249_s6] sm:$0x1] }
 0x2af   : > { %v891_v35 = vpop.permute.xlu1 %890 }
 0x2b0   : > { %v936_v21 = vmul.f32 %v891_v35, %v1839_v26  ;;  %v926_v26 = vpop.permute.xlu0 %925 }
 0x2b2   : > { %v951_v37 = vadd.f32 %v950_v36, %v936_v21 }
 0x2b3   : > { %v901_v43 = vpop.permute.xlu1 %900 }
 0x2b4   : > { %v938_v23 = vmul.f32 %v901_v43, %v1847_v28  ;;  %v952_v18 = vadd.f32 %v951_v37, %v937_v22  ;;  %v943_v28 = vmul.f32 %v926_v26, %v1868_v33 }
 0x2b6   : > { %v953_v9 = vadd.f32 %v952_v18, %v938_v23 }
 0x2b7   : > { %v911_v38 = vpop.permute.xlu1 %910 }
 0x2b8   : > { %v940_v25 = vmul.f32 %v911_v38, %v1855_v30  ;;  %v954_v10 = vadd.f32 %v953_v9, %v939_v24 }
 0x2ba   : > { %v955_v44 = vadd.f32 %v954_v10, %v940_v25 }
 0x2bb   : > { %v921_v41 = vpop.permute.xlu1 %920 }
 0x2bc   : > { %v942_v27 = vmul.f32 %v921_v41, %v1863_v32  ;;  %v956_v47 = vadd.f32 %v955_v44, %v941_v40 }
 0x2be   : > { %v957_v15 = vadd.f32 %v956_v47, %v942_v27 }
 0x2c0   : > { %v958_v48 = vadd.f32 %v957_v15, %v943_v28 }
 0x2c2   : > { %v959_v17 = vrot.slane %v958_v48, 4 }
 0x2c4   : > { %v960_v29 = vadd.f32 %v959_v17, %v958_v48 }
 0x2c6   : > { %v961_v56 = vrot.slane %v960_v29, 2 }
 0x2c8   : > { %v962_v39 = vadd.f32 %v961_v56, %v960_v29 }
 0x2ca   : > { %v963_v45 = vrot.slane %v962_v39, 1 }
 0x2cc   : > { %v964_v30 = vadd.f32 %v963_v45, %v962_v39 }
 0x2ce   : > { %1457 = vmatmul.mubr.f32.vlgmr.msra.gmra.mxu1 %v964_v30 }
 0x2d0   : > { %v1080_v31 = vpop.xlane.xlu0 %1079 }
 0x2d1   : > { %v1117_v32 = vadd.f32 %v1312_v49, %v1080_v31 }
 0x2d3   : > { %1149 = vst.msk [vmem:[%s2166_s16 + $0x8] sm:$0xff] %vm708_vm1, %v1117_v32 }
 0x2d4   : > { %v1082_v33 = vpop.xlane.xlu0 %1081 }
 0x2d5   : > { %v1118_v57 = vadd.f32 %v1312_v49, %v1082_v33 }
 0x2d7   : > { %1150 = vst.msk [vmem:[%s2166_s16 + $0x10] sm:$0xff] %vm708_vm1, %v1118_v57 }
 0x2d8   : > { %v1086_v34 = vpop.xlane.xlu0 %1085 }
 0x2d9   : > { %v1120_v51 = vadd.f32 %v1312_v49, %v1086_v34 }
 0x2db   : > { %1152 = vst.msk [vmem:[%s2166_s16 + $0x20] sm:$0xff] %vm708_vm1, %v1120_v51 }
 0x2dc   : > { %v1090_v53 = vpop.xlane.xlu0 %1089 }
 0x2dd   : > { %v1122_v2 = vadd.f32 %v1312_v49, %v1090_v53 }
 0x2df   : > { %1154 = vst.msk [vmem:[%s2166_s16 + $0x30] sm:$0xff] %vm708_vm1, %v1122_v2 }
 0x2e0   : > { %v1094_v54 = vpop.xlane.xlu0 %1093 }
 0x2e1   : > { %v1124_v58 = vadd.f32 %v1312_v49, %v1094_v54 }
 0x2e3   : > { %1156 = vst.msk [vmem:[%s2166_s16 + $0x40] sm:$0xff] %vm708_vm1, %v1124_v58 }
 0x2e4   : > { %v1098_v60 = vpop.xlane.xlu0 %1097 }
 0x2e5   : > { %v1126_v61 = vadd.f32 %v1312_v49, %v1098_v60 }
 0x2e7   : > { %1158 = vst.msk [vmem:[%s2166_s16 + $0x50] sm:$0xff] %vm708_vm1, %v1126_v61 }
 0x2e8   : > { %v1102_v12 = vpop.xlane.xlu0 %1101 }
 0x2e9   : > { %v1128_v13 = vadd.f32 %v1312_v49, %v1102_v12 }
 0x2eb   : > { %1160 = vst.msk [vmem:[%s2166_s16 + $0x60] sm:$0xff] %vm708_vm1, %v1128_v13 }
 0x2ec   : > { %v1106_v19 = vpop.xlane.xlu0 %1105 }
 0x2ed   : > { %v1078_v59 = vpop.xlane.xlu1 %1077  ;;  %v1130_v7 = vadd.f32 %v1312_v49, %v1106_v19 }
 0x2ee   : > { %v1116_v11 = vadd.f32 %v1312_v49, %v1078_v59 }
 0x2ef   : > { %1162 = vst.msk [vmem:[%s2166_s16 + $0x70] sm:$0xff] %vm708_vm1, %v1130_v7 }
 0x2f0   : > { %1148 = vst.msk [vmem:[%s2166_s16] sm:$0xff] %vm708_vm1, %v1116_v11 }
 0x2f1   : > { %v1084_v63 = vpop.xlane.xlu1 %1083 }
 0x2f2   : > { %v1119_v0 = vadd.f32 %v1312_v49, %v1084_v63 }
 0x2f4   : > { %1151 = vst.msk [vmem:[%s2166_s16 + $0x18] sm:$0xff] %vm708_vm1, %v1119_v0 }
 0x2f5   : > { %v1088_v14 = vpop.xlane.xlu1 %1087 }
 0x2f6   : > { %v1121_v50 = vadd.f32 %v1312_v49, %v1088_v14 }
 0x2f8   : > { %1153 = vst.msk [vmem:[%s2166_s16 + $0x28] sm:$0xff] %vm708_vm1, %v1121_v50 }
 0x2f9   : > { %v1092_v46 = vpop.xlane.xlu1 %1091 }
 0x2fa   : > { %v1123_v1 = vadd.f32 %v1312_v49, %v1092_v46 }
 0x2fc   : > { %1155 = vst.msk [vmem:[%s2166_s16 + $0x38] sm:$0xff] %vm708_vm1, %v1123_v1 }
 0x2fd   : > { %v1096_v3 = vpop.xlane.xlu1 %1095 }
 0x2fe   : > { %v1125_v52 = vadd.f32 %v1312_v49, %v1096_v3 }
 0x300   : > { %1157 = vst.msk [vmem:[%s2166_s16 + $0x48] sm:$0xff] %vm708_vm1, %v1125_v52 }
 0x301   : > { %v1100_v55 = vpop.xlane.xlu1 %1099 }
 0x302   : > { %v1127_v16 = vadd.f32 %v1312_v49, %v1100_v55 }
 0x304   : > { %1159 = vst.msk [vmem:[%s2166_s16 + $0x58] sm:$0xff] %vm708_vm1, %v1127_v16 }
 0x305   : > { %v1104_v62 = vpop.xlane.xlu1 %1103 }
 0x306   : > { %v1129_v4 = vadd.f32 %v1312_v49, %v1104_v62 }
 0x308   : > { %1161 = vst.msk [vmem:[%s2166_s16 + $0x68] sm:$0xff] %vm708_vm1, %v1129_v4 }
 0x309   : > { %v1108_v5 = vpop.xlane.xlu1 %1107 }
 0x30a   : > { %v1131_v6 = vadd.f32 %v1312_v49, %v1108_v5 }
 0x30c   : > { %1163 = vst.msk [vmem:[%s2166_s16 + $0x78] sm:$0xff] %vm708_vm1, %v1131_v6  ;;  %s1573_s16 = sshll.u32 %s1634_s4, 4  ;;  %s1574_s16 = int_to_ptr.vmem [resolvable:$false] %s1573_s16 }
 0x30d   : > { %s1575_s17 = scalar_lea.vmem %s1574_s16, 32  ;;  %p1576_p0 = scmp.lt.s32.totalorder %s1188_s20, %s1574_s16 }
 0x30e   : > { %p1577_p1 = scmp.lt.s32.totalorder %s1575_s17, %s1569_s15 }
 0x310   : > { %p1578_p2 = por %p1577_p1, %p1576_p0 }
 0x312   : > { %p1579_p3 = pnand %p1578_p2, %p1572_p13 }
 0x38e   : > { %v1048_v42 = vpop.f32.mrf.mxu1 }
 0x38f   : > { %v1049_v35 = vadd.f32 %v1048_v42, %v981_v20 }
 0x390   : > { %v1458_v36 = vpop.f32.mrf.mxu1 }
 0x391   : > { %1053 = vst.msk [vmem:[%s383_s19] sm:$0x1] %vm1052_vm3, %v1049_v35 }
 0x392   : > { %1582 = shalt.err (!%p1579_p3)
}
 0x393   : > { %s1583_s18 = scalar_lea.hbm %s2208_s13, 16  ;;  %s1587_s19 = scalar_lea.hbm %s2251_s9, 32 }
 0x394   : > { %p1584_p4 = scmp.ne.s32.totalorder %s2208_s13, %s1583_s18  ;;  %p1588_p9 = scmp.lt.s32.totalorder %s2208_s13, %s2251_s9 }
 0x395   : > { %p1589_p10 = scmp.lt.s32.totalorder %s1587_s19, %s1583_s18 }
 0x396   : > { %p1585_p7 = pnand %p1584_p4, %p1739_p5 }
 0x397   : > { %p1590_p11 = por %p1589_p10, %p1588_p9 }
 0x398   : > { %p1586_p8 = pneg %p1585_p7 }
 0x39a   : > { %p1591_p12 = pnand %p1590_p11, %p1586_p8 }
 0x39c   : > { %1594 = shalt.err (!%p1591_p12)
}
 0x39d   : > { %1459 = dma.vmem_to_hbm [thread:$0]  (%p1739_p5), %s1188_s20, 16, %s2208_s13, %s1165_s14  }
 0x39e PF: > { %p1465_p13 = scmp.ge.s32.totalorder %s1629_s24, 2  ;;  %s1205_s15 = sand.u32 1, %s1617_s21  }
 0x39f   : > { %s1206_s4 = scalar_lea.sflag [#allocation5], %s1205_s15 }
 0x3a0   : > { %p1462_p0 = pnand %p1465_p13, %p1743_p6 }
 0x3a2   : > { %p1463_p1 = pneg %p1462_p0 }
 0x3a4   : > { %1612 = dma.done.wait (%p1463_p1), %s1206_s4, 16  }
 0x3a5   : > { %1614 = vsyncadd (%p1463_p1), %s1206_s4, 4294967280  ;;  %p26_p2 = scmp.ge.s32.totalorder %s1726_s25, 4   ;;  %s2257_s21 = smov %s1621_s22 }
 0x3a6   : > { %s2258_s22 = smov %s1625_s23  ;;  %s2259_s23 = smov %s1737_s28 }
 0x3a7   : > { %s2260_s24 = smov %s1726_s25  ;;  %28 = sbr.rel (!%p26_p2) target bundleno = 6 (0x6), region = 115 }
 0x3ac   :  { %1226 = vsyncpa [#allocation5], 1 }
 0x3ad   :  { %1228 = vsyncpa [#allocation5 + $0x1], 1 }

</bundles_post_ra>
